<compile_context>
chip_gen: v7x
topology: tpu7x:2x2x1
jax: 0.10.0
libtpu: 0.0.40
codegen_flags: <defaults>
</compile_context>

<pallas_src>
import functools
import math

import jax
import jax.numpy as jnp
from jax import lax
from jax.experimental import pallas as pl
from jax.experimental.pallas import tpu as pltpu

_NEG_BIG = -1e30  # finite "minus infinity" for key-padding mask (safe in bf16/f32)


def _attn_kernel(q_ref, k_ref, b_ref, v_ref, o_ref, *scratch,
                 sm_scale, cast_bf16, acc_in_out):
    # q_ref: (TQ, D)    k_ref: (TKV, D)    b_ref: (TQ, TKV)
    # v_ref: (TKV, S)   o_ref: (TQ, S)
    m_sc, l_sc = scratch[0], scratch[1]
    acc = o_ref if acc_in_out else scratch[2]

    ki = pl.program_id(2)

    @pl.when(ki == 0)
    def _():
        m_sc[...] = jnp.full_like(m_sc, -jnp.inf)
        l_sc[...] = jnp.zeros_like(l_sc)
        acc[...] = jnp.zeros_like(acc)

    q = q_ref[...]
    k = k_ref[...]
    if cast_bf16:
        q = q.astype(jnp.bfloat16)
        k = k.astype(jnp.bfloat16)

    # s = q @ k^T, contracting the last dims directly (no XLU transpose).
    s = lax.dot_general(
        q, k, dimension_numbers=(((1,), (1,)), ((), ())),
        preferred_element_type=jnp.float32,
    )                                            # (TQ, TKV), f32
    # Fold 1/sqrt(D) and the additive bias in f32 (VALU slack under the MXU;
    # avoids re-scaling q every ki step and avoids rounding the scale to bf16).
    s = s * sm_scale + b_ref[...].astype(jnp.float32)

    # Online (flash-style) softmax update, statistics in f32.
    m_prev = m_sc[...]
    m_new = jnp.maximum(m_prev, jnp.max(s, axis=-1, keepdims=True))
    alpha = jnp.exp(m_prev - m_new)              # 0 on the first step (m_prev = -inf)
    p = jnp.exp(s - m_new)                       # (TQ, TKV), f32

    l_sc[...] = alpha * l_sc[...] + jnp.sum(p, axis=-1, keepdims=True)

    v = v_ref[...]
    if cast_bf16:
        v = v.astype(jnp.bfloat16)
        p_mm = p.astype(jnp.bfloat16)
    else:
        p_mm = p.astype(v.dtype)
    acc[...] = alpha * acc[...] + jnp.dot(p_mm, v, preferred_element_type=jnp.float32)
    m_sc[...] = m_new

    @pl.when(ki == pl.num_programs(2) - 1)
    def _():
        inv_l = pl.reciprocal(l_sc[...], approx=False)   # exact; runs once per q-tile
        o_ref[...] = (acc[...] * inv_l).astype(o_ref.dtype)


def _tpu_vmem_and_caps():
    """Best-effort generation detection (conservative fallback)."""
    kind = ""
    try:
        kind = jax.devices()[0].device_kind.lower()
    except Exception:
        pass
    is_v5e = ("v5 lite" in kind) or ("v5e" in kind) or ("v5lite" in kind)
    if any(t in kind for t in ("v4", "v5", "v6")):
        vmem_cap = 128 * 1024 * 1024
    else:
        # v7x (64 MiB / TC) or unknown -> conservative.
        vmem_cap = 64 * 1024 * 1024
    return vmem_cap, is_v5e


def _pick_tiles(S_pad, D, in_bytes, x3_bytes, out_bytes, acc_in_out,
                vmem_budget, tq_cap):
    """Largest tiles (TQ priority) whose double-buffered working set fits VMEM."""
    if S_pad <= 512:
        # Full-S blocks are always legal and trivially fit for small S.
        return S_pad, S_pad

    def working_set(tq, tkv):
        ws = 2 * tq * D * in_bytes            # q tile (double buffered)
        ws += 2 * tkv * D * in_bytes          # k tile
        ws += 2 * tq * tkv * x3_bytes         # bias tile
        ws += 2 * tkv * S_pad * x3_bytes      # value tile (dominant stream)
        ws += 2 * tq * S_pad * out_bytes      # resident output block
        ws += 4 * tq * 4                      # m / l scratch
        if not acc_in_out:
            ws += tq * S_pad * 4              # f32 accumulator scratch
        return ws

    tq_cands = [t for t in (1024, 512, 256, 128) if t <= tq_cap and S_pad % t == 0]
    tkv_cands = [t for t in (1024, 512, 256, 128) if S_pad % t == 0]
    if not tq_cands:
        tq_cands = [128]
    if not tkv_cands:
        tkv_cands = [128]

    # TQ is the primary lever (cuts V re-streaming, S^3/TQ bytes); TKV second
    # (cuts per-q-tile flash-update count).
    for tq in tq_cands:
        for tkv in tkv_cands:
            if working_set(tq, tkv) <= vmem_budget:
                return tq, tkv
    return tq_cands[-1], tkv_cands[-1]


def model_forward(x1, x2, x3, *, prefer_bf16_matmul=True):
    """x1: (B, S, D), x2: (B, S, D), x3: (B, S, S) -> (B, S, S)."""
    B, S, D = x1.shape
    assert x2.shape == (B, S, D)
    assert x3.shape == (B, S, S)

    in_dtype = x1.dtype
    out_dtype = x1.dtype
    cast_bf16 = bool(prefer_bf16_matmul) and jnp.dtype(in_dtype) == jnp.float32
    acc_in_out = jnp.dtype(out_dtype) == jnp.float32

    # Pad S up to a multiple of 128 for large ragged S so flash tiling stays
    # usable (full-S fallback only for small S).
    if S <= 512:
        S_pad = S
    else:
        S_pad = ((S + 127) // 128) * 128
    if S_pad != S:
        dS = S_pad - S
        x1 = jnp.pad(x1, ((0, 0), (0, dS), (0, 0)))
        x2 = jnp.pad(x2, ((0, 0), (0, dS), (0, 0)))
        # -1e30 padding: masks padded key columns in the bias (softmax weight 0);
        # padded V rows are zero-weighted and padded output rows/cols are sliced off.
        x3 = jnp.pad(x3, ((0, 0), (0, dS), (0, dS)), constant_values=_NEG_BIG)

    vmem_cap, is_v5e = _tpu_vmem_and_caps()
    vmem_limit = int(vmem_cap * 0.85)          # leave headroom for compiler scratch
    vmem_budget = int(vmem_limit * 0.9)
    tq_cap = 512 if is_v5e else 1024           # v5e crosses into MXU-bound at 512

    in_bytes = jnp.dtype(in_dtype).itemsize
    x3_bytes = jnp.dtype(x3.dtype).itemsize
    out_bytes = jnp.dtype(out_dtype).itemsize

    TQ, TKV = _pick_tiles(S_pad, D, in_bytes, x3_bytes, out_bytes,
                          acc_in_out, vmem_budget, tq_cap)

    # Megacore balance: make sure the sharded (parallel) extent B*(S/TQ) >= 2.
    if (S_pad > 512 and B * (S_pad // TQ) < 2 and TQ >= 256
            and (TQ // 2) % 128 == 0 and S_pad % (TQ // 2) == 0):
        TQ = TQ // 2

    grid = (B, S_pad // TQ, S_pad // TKV)

    kernel = functools.partial(
        _attn_kernel,
        sm_scale=float(1.0 / math.sqrt(D)),
        cast_bf16=cast_bf16,
        acc_in_out=acc_in_out,
    )

    scratch_shapes = [
        pltpu.VMEM((TQ, 1), jnp.float32),   # running max
        pltpu.VMEM((TQ, 1), jnp.float32),   # running sum
    ]
    if not acc_in_out:
        scratch_shapes.append(pltpu.VMEM((TQ, S_pad), jnp.float32))  # accumulator

    out = pl.pallas_call(
        kernel,
        out_shape=jax.ShapeDtypeStruct((B, S_pad, S_pad), out_dtype),
        grid_spec=pltpu.PrefetchScalarGridSpec(
            num_scalar_prefetch=0,
            grid=grid,
            in_specs=[
                # q tile
                pl.BlockSpec((None, TQ, D), lambda b, qi, ki: (b, qi, 0)),
                # k tile
                pl.BlockSpec((None, TKV, D), lambda b, qi, ki: (b, ki, 0)),
                # x3 as additive bias tile
                pl.BlockSpec((None, TQ, TKV), lambda b, qi, ki: (b, qi, ki)),
                # x3 as value tile (lane-dense full-S last dim)
                pl.BlockSpec((None, TKV, S_pad), lambda b, qi, ki: (b, ki, 0)),
            ],
            out_specs=pl.BlockSpec((None, TQ, S_pad), lambda b, qi, ki: (b, qi, 0)),
            scratch_shapes=scratch_shapes,
        ),
        compiler_params=pltpu.CompilerParams(
            dimension_semantics=("parallel", "parallel", "arbitrary"),
            vmem_limit_bytes=vmem_limit,
        ),
    )(x1, x2, x3, x3)

    if S_pad != S:
        out = out[:, :S, :S]
    return out


def _reference(x1, x2, x3):
    s = jnp.einsum("bmd,bnd->bmn", x1, x2) / math.sqrt(x1.shape[-1])
    s = s + x3
    p = jax.nn.softmax(s, axis=-1)
    return jnp.einsum("bmn,bnk->bmk", p, x3)


if __name__ == "__main__":
    key = jax.random.PRNGKey(0)
    k1, k2, k3 = jax.random.split(key, 3)

    B, S, D = 2, 8, 32
    x1 = jax.random.normal(k1, (B, S, D), dtype=jnp.float32)
    x2 = jax.random.normal(k2, (B, S, D), dtype=jnp.float32)
    x3 = jax.random.normal(k3, (B, S, S), dtype=jnp.float32)

    ref = _reference(x1, x2, x3)

    # Exact-precision path (f32 MXU operands, exact reciprocal): tight tolerance.
    out_exact = jax.block_until_ready(model_forward(x1, x2, x3, prefer_bf16_matmul=False))
    assert jnp.allclose(out_exact, ref, atol=1e-4, rtol=1e-4), "exact path mismatch"

    # Default fast path (bf16 MXU operands, f32 accumulation): flash-standard accuracy.
    out_fast = jax.block_until_ready(model_forward(x1, x2, x3))
    assert jnp.allclose(out_fast, ref, atol=2e-2, rtol=2e-2), "bf16 path mismatch"

    print("KERNEL_OK")
</pallas_src>

<mosaic_0001>
module attributes {stable_mosaic.version = 11 : i64} {
  func.func @_attn_kernel(%arg0: i32, %arg1: i32, %arg2: i32, %arg3: memref<1x8x32xf32, #tpu.memory_space<vmem>>, %arg4: memref<1x8x32xf32, #tpu.memory_space<vmem>>, %arg5: memref<1x8x8xf32, #tpu.memory_space<vmem>>, %arg6: memref<1x8x8xf32, #tpu.memory_space<vmem>>, %arg7: memref<1x8x8xf32, #tpu.memory_space<vmem>>, %arg8: memref<8x1xf32, #tpu.memory_space<vmem>>, %arg9: memref<8x1xf32, #tpu.memory_space<vmem>>) attributes {dimension_semantics = [#tpu.dimension_semantics<parallel>, #tpu.dimension_semantics<parallel>, #tpu.dimension_semantics<arbitrary>], iteration_bounds = array<i64: 2, 1, 1>, scalar_prefetch = 0 : i64, scratch_operands = 2 : i64, tpu.core_type = #tpu.core_type<tc>, window_params = [{transform_indices = @transform_0, window_bounds = array<i64: 1, 8, 32>}, {transform_indices = @transform_1, window_bounds = array<i64: 1, 8, 32>}, {transform_indices = @transform_2, window_bounds = array<i64: 1, 8, 8>}, {transform_indices = @transform_3, window_bounds = array<i64: 1, 8, 8>}, {transform_indices = @transform_4, window_bounds = array<i64: 1, 8, 8>}]} {
    %c0_i32 = arith.constant 0 : i32
    %0 = arith.cmpi eq, %arg2, %c0_i32 : i32
    %1 = arith.extui %0 : i1 to i32
    %c0_i32_0 = arith.constant 0 : i32
    %2 = arith.cmpi ne, %1, %c0_i32_0 : i32
    scf.if %2 {
      %cst_32 = arith.constant 0xFF800000 : f32
      %43 = vector.broadcast %cst_32 : f32 to vector<8x1xf32>
      %c0_33 = arith.constant 0 : index
      %c0_34 = arith.constant 0 : index
      %44 = vector.load %arg8[%c0_33, %c0_34] : memref<8x1xf32, #tpu.memory_space<vmem>>, vector<8x1xf32>
      tpu.vector_store %arg8[%c0_33, %c0_34], %43 {strides = array<i32>} : memref<8x1xf32, #tpu.memory_space<vmem>>, vector<8x1xf32>,
      %cst_35 = arith.constant 0.000000e+00 : f32
      %45 = vector.broadcast %cst_35 : f32 to vector<8x1xf32>
      %c0_36 = arith.constant 0 : index
      %c0_37 = arith.constant 0 : index
      %46 = vector.load %arg9[%c0_36, %c0_37] : memref<8x1xf32, #tpu.memory_space<vmem>>, vector<8x1xf32>
      tpu.vector_store %arg9[%c0_36, %c0_37], %45 {strides = array<i32>} : memref<8x1xf32, #tpu.memory_space<vmem>>, vector<8x1xf32>,
      %cst_38 = arith.constant 0.000000e+00 : f32
      %47 = vector.broadcast %cst_38 : f32 to vector<8x8xf32>
      %c0_39 = arith.constant 0 : index
      %c0_40 = arith.constant 0 : index
      %c0_41 = arith.constant 0 : index
      %48 = vector.load %arg7[%c0_39, %c0_40, %c0_41] : memref<1x8x8xf32, #tpu.memory_space<vmem>>, vector<1x8x8xf32>
      %49 = vector.shape_cast %48 : vector<1x8x8xf32> to vector<8x8xf32>
      %50 = vector.shape_cast %47 : vector<8x8xf32> to vector<1x8x8xf32>
      tpu.vector_store %arg7[%c0_39, %c0_40, %c0_41], %50 {strides = array<i32>} : memref<1x8x8xf32, #tpu.memory_space<vmem>>, vector<1x8x8xf32>,
    } else {
    }
    %c0 = arith.constant 0 : index
    %c0_1 = arith.constant 0 : index
    %c0_2 = arith.constant 0 : index
    %3 = vector.load %arg3[%c0, %c0_1, %c0_2] : memref<1x8x32xf32, #tpu.memory_space<vmem>>, vector<1x8x32xf32>
    %4 = vector.shape_cast %3 : vector<1x8x32xf32> to vector<8x32xf32>
    %c0_3 = arith.constant 0 : index
    %c0_4 = arith.constant 0 : index
    %c0_5 = arith.constant 0 : index
    %5 = vector.load %arg4[%c0_3, %c0_4, %c0_5] : memref<1x8x32xf32, #tpu.memory_space<vmem>>, vector<1x8x32xf32>
    %6 = vector.shape_cast %5 : vector<1x8x32xf32> to vector<8x32xf32>
    %cst = arith.constant dense<0.000000e+00> : vector<8x8xf32>
    %7 = tpu.matmul %4, %6, %cst {dimension_numbers = #tpu.dot_dimension_numbers<[1], [1], [0], [0], [0, 0, 1, 0], [], []>} : vector<8x32xf32>, vector<8x32xf32>, vector<8x8xf32> -> vector<8x8xf32>
    %cst_6 = arith.constant 0.176776692 : f32
    %8 = vector.broadcast %cst_6 : f32 to vector<8x8xf32>
    %9 = arith.mulf %7, %8 : vector<8x8xf32>
    %c0_7 = arith.constant 0 : index
    %c0_8 = arith.constant 0 : index
    %c0_9 = arith.constant 0 : index
    %10 = vector.load %arg5[%c0_7, %c0_8, %c0_9] : memref<1x8x8xf32, #tpu.memory_space<vmem>>, vector<1x8x8xf32>
    %11 = vector.shape_cast %10 : vector<1x8x8xf32> to vector<8x8xf32>
    %12 = arith.addf %9, %11 : vector<8x8xf32>
    %c0_10 = arith.constant 0 : index
    %c0_11 = arith.constant 0 : index
    %13 = vector.load %arg8[%c0_10, %c0_11] : memref<8x1xf32, #tpu.memory_space<vmem>>, vector<8x1xf32>
    %cst_12 = arith.constant dense<0xFF800000> : vector<8xf32>
    %14 = vector.multi_reduction <maximumf>, %12, %cst_12 [1] : vector<8x8xf32> to vector<8xf32>
    %15 = vector.shape_cast %14 : vector<8xf32> to vector<8x1xf32>
    %16 = arith.maximumf %13, %15 : vector<8x1xf32>
    %17 = arith.subf %13, %16 : vector<8x1xf32>
    %18 = math.exp %17 : vector<8x1xf32>
    %19 = vector.broadcast %16 : vector<8x1xf32> to vector<8x8xf32>
    %20 = arith.subf %12, %19 : vector<8x8xf32>
    %21 = math.exp %20 : vector<8x8xf32>
    %c0_13 = arith.constant 0 : index
    %c0_14 = arith.constant 0 : index
    %22 = vector.load %arg9[%c0_13, %c0_14] : memref<8x1xf32, #tpu.memory_space<vmem>>, vector<8x1xf32>
    %23 = arith.mulf %18, %22 : vector<8x1xf32>
    %cst_15 = arith.constant dense<0.000000e+00> : vector<8xf32>
    %24 = vector.multi_reduction <add>, %21, %cst_15 [1] : vector<8x8xf32> to vector<8xf32>
    %25 = vector.shape_cast %24 : vector<8xf32> to vector<8x1xf32>
    %26 = arith.addf %23, %25 : vector<8x1xf32>
    %c0_16 = arith.constant 0 : index
    %c0_17 = arith.constant 0 : index
    %27 = vector.load %arg9[%c0_16, %c0_17] : memref<8x1xf32, #tpu.memory_space<vmem>>, vector<8x1xf32>
    tpu.vector_store %arg9[%c0_16, %c0_17], %26 {strides = array<i32>} : memref<8x1xf32, #tpu.memory_space<vmem>>, vector<8x1xf32>,
    %c0_18 = arith.constant 0 : index
    %c0_19 = arith.constant 0 : index
    %c0_20 = arith.constant 0 : index
    %28 = vector.load %arg6[%c0_18, %c0_19, %c0_20] : memref<1x8x8xf32, #tpu.memory_space<vmem>>, vector<1x8x8xf32>
    %29 = vector.shape_cast %28 : vector<1x8x8xf32> to vector<8x8xf32>
    %c0_21 = arith.constant 0 : index
    %c0_22 = arith.constant 0 : index
    %c0_23 = arith.constant 0 : index
    %30 = vector.load %arg7[%c0_21, %c0_22, %c0_23] : memref<1x8x8xf32, #tpu.memory_space<vmem>>, vector<1x8x8xf32>
    %31 = vector.shape_cast %30 : vector<1x8x8xf32> to vector<8x8xf32>
    %32 = vector.broadcast %18 : vector<8x1xf32> to vector<8x8xf32>
    %33 = arith.mulf %32, %31 : vector<8x8xf32>
    %cst_24 = arith.constant dense<0.000000e+00> : vector<8x8xf32>
    %34 = tpu.matmul %21, %29, %cst_24 {dimension_numbers = #tpu.dot_dimension_numbers<[1], [0], [0], [1], [0, 0, 1, 1], [], []>} : vector<8x8xf32>, vector<8x8xf32>, vector<8x8xf32> -> vector<8x8xf32>
    %35 = arith.addf %33, %34 : vector<8x8xf32>
    %c0_25 = arith.constant 0 : index
    %c0_26 = arith.constant 0 : index
    %c0_27 = arith.constant 0 : index
    %36 = vector.load %arg7[%c0_25, %c0_26, %c0_27] : memref<1x8x8xf32, #tpu.memory_space<vmem>>, vector<1x8x8xf32>
    %37 = vector.shape_cast %36 : vector<1x8x8xf32> to vector<8x8xf32>
    %38 = vector.shape_cast %35 : vector<8x8xf32> to vector<1x8x8xf32>
    tpu.vector_store %arg7[%c0_25, %c0_26, %c0_27], %38 {strides = array<i32>} : memref<1x8x8xf32, #tpu.memory_space<vmem>>, vector<1x8x8xf32>,
    %c0_28 = arith.constant 0 : index
    %c0_29 = arith.constant 0 : index
    %39 = vector.load %arg8[%c0_28, %c0_29] : memref<8x1xf32, #tpu.memory_space<vmem>>, vector<8x1xf32>
    tpu.vector_store %arg8[%c0_28, %c0_29], %16 {strides = array<i32>} : memref<8x1xf32, #tpu.memory_space<vmem>>, vector<8x1xf32>,
    %c0_i32_30 = arith.constant 0 : i32
    %40 = arith.cmpi eq, %arg2, %c0_i32_30 : i32
    %41 = arith.extui %40 : i1 to i32
    %c0_i32_31 = arith.constant 0 : i32
    %42 = arith.cmpi ne, %41, %c0_i32_31 : i32
    scf.if %42 {
      %c0_32 = arith.constant 0 : index
      %c0_33 = arith.constant 0 : index
      %43 = vector.load %arg9[%c0_32, %c0_33] : memref<8x1xf32, #tpu.memory_space<vmem>>, vector<8x1xf32>
      %44 = tpu.reciprocal %43 : vector<8x1xf32> -> vector<8x1xf32>
      %c0_34 = arith.constant 0 : index
      %c0_35 = arith.constant 0 : index
      %c0_36 = arith.constant 0 : index
      %45 = vector.load %arg7[%c0_34, %c0_35, %c0_36] : memref<1x8x8xf32, #tpu.memory_space<vmem>>, vector<1x8x8xf32>
      %46 = vector.shape_cast %45 : vector<1x8x8xf32> to vector<8x8xf32>
      %47 = vector.broadcast %44 : vector<8x1xf32> to vector<8x8xf32>
      %48 = arith.mulf %46, %47 : vector<8x8xf32>
      %c0_37 = arith.constant 0 : index
      %c0_38 = arith.constant 0 : index
      %c0_39 = arith.constant 0 : index
      %49 = vector.load %arg7[%c0_37, %c0_38, %c0_39] : memref<1x8x8xf32, #tpu.memory_space<vmem>>, vector<1x8x8xf32>
      %50 = vector.shape_cast %49 : vector<1x8x8xf32> to vector<8x8xf32>
      %51 = vector.shape_cast %48 : vector<8x8xf32> to vector<1x8x8xf32>
      tpu.vector_store %arg7[%c0_37, %c0_38, %c0_39], %51 {strides = array<i32>} : memref<1x8x8xf32, #tpu.memory_space<vmem>>, vector<1x8x8xf32>,
    } else {
    }
    return
  }
  func.func @transform_0(%arg0: i32, %arg1: i32, %arg2: i32) -> (i32, i32, i32) {
    %c0_i32 = arith.constant 0 : i32
    %c0_i32_0 = arith.constant 0 : i32
    return %arg0, %arg1, %c0_i32 : i32, i32, i32
  }
  func.func @transform_1(%arg0: i32, %arg1: i32, %arg2: i32) -> (i32, i32, i32) {
    %c0_i32 = arith.constant 0 : i32
    %c0_i32_0 = arith.constant 0 : i32
    return %arg0, %arg2, %c0_i32 : i32, i32, i32
  }
  func.func @transform_2(%arg0: i32, %arg1: i32, %arg2: i32) -> (i32, i32, i32) {
    %c0_i32 = arith.constant 0 : i32
    return %arg0, %arg1, %arg2 : i32, i32, i32
  }
  func.func @transform_3(%arg0: i32, %arg1: i32, %arg2: i32) -> (i32, i32, i32) {
    %c0_i32 = arith.constant 0 : i32
    %c0_i32_0 = arith.constant 0 : i32
    return %arg0, %arg2, %c0_i32 : i32, i32, i32
  }
  func.func @transform_4(%arg0: i32, %arg1: i32, %arg2: i32) -> (i32, i32, i32) {
    %c0_i32 = arith.constant 0 : i32
    %c0_i32_0 = arith.constant 0 : i32
    return %arg0, %arg1, %c0_i32 : i32, i32, i32
  }
}

</mosaic_0001>

<bundles_post_ra>
// kernel: tpu_custom_call.1
= control target key start
LH: loop header
LB: loop body
LE: loop exit
PB: predicated region body
PF: predicated region fallthrough
CT: control target
= control target key end

     0   :  { %s1419_s0 = inlined_call_operand.hbm [shape: f32[2,8,32], index: 0, kind: input, shape index: {}]   ;;  %s1420_s1 = inlined_call_operand.hbm [shape: f32[2,8,32], index: 1, kind: input, shape index: {}]   ;;  %s1421_s2 = inlined_call_operand.hbm [shape: f32[2,8,8], index: 2, kind: input, shape index: {}]   ;;  %s1422_s3 = inlined_call_operand.hbm [shape: f32[2,8,8], index: 3, kind: input, shape index: {}]   ;;  %s1423_s4 = inlined_call_operand.hbm [shape: f32[2,8,8], index: 4, kind: output, shape index: {}]  }
   0x1   :  { %1433 = sst [smem:[#allocation22_spill]] %s1420_s1 }
   0x2   :  { %9 = vsyncpa [#allocation5], 0 }
   0x3   :  { %11 = vsyncpa [#allocation5 + $0x1], 0 }
   0x4   :  { %12 = vsyncpa [#allocation8], 0 }
   0x5   :  { %14 = vsyncpa [#allocation8 + $0x1], 0 }
   0x6   :  { %15 = vsyncpa [#allocation11], 0 }
   0x7   :  { %17 = vsyncpa [#allocation11 + $0x1], 0 }
   0x8   :  { %18 = vsyncpa [#allocation6], 0 }
   0x9   :  { %20 = vsyncpa [#allocation6 + $0x1], 0  ;;  %s1112_s15 = smov 0   ;;  %s1114_s16 = smov 0  }
   0xa   :  { %s1116_s17 = smov 0   ;;  %s1118_s18 = smov 0  }
   0xb   :  { %s1120_s19 = smov 0   ;;  %s1122_s20 = smov 0  }
   0xc LB: > { %1434 = sst [smem:[#allocation17_spill]] %s1064_s17  ;;  %s1143_s21 = sadd.s32 4294967295, %s1076_s20   ;;  %s1076_s20 = sphi %s1122_s20, %s26_s20   ;;  %s1072_s19 = sphi %s1120_s19, %s1460_s19   ;;  %s1068_s18 = sphi %s1118_s18, %s1459_s18   ;;  %s1064_s17 = sphi %s1116_s17, %s1458_s17   ;;  %s1060_s16 = sphi %s1114_s16, %s1462_s16   ;;  %s1056_s15 = sphi %s1112_s15, %s1461_s15  }
   0xd   : > { %1435 = sst [smem:[#allocation18_spill]] %s1072_s19  ;;  %s739_s22 = sadd.s32 4294967294, %s1076_s20  }
   0xe   : > { %1436 = sst [smem:[#allocation19_spill]] %s1076_s20  ;;  %s45_s23 = sadd.s32 1, %s1072_s19 }
   0xf   : > { %s54_s24 = sadd.s32 1, %s1064_s17  ;;  %p47_p0 = scmp.ge.s32.totalorder %s45_s23, 2 }
  0x10   : > { %p61_p1 = scmp.ne.s32.totalorder %s1064_s17, %s1060_s16  ;;  %p62_p2 = scmp.eq.s32.totalorder %s1076_s20, 0 }
  0x11   : > { %p67_p3 = scmp.ne.s32.totalorder %s1060_s16, %s1056_s15  ;;  %s1464_s23 = smov (%p47_p0, %s45_s23), 0 }
  0x12   : > { %1437 = sst [smem:[#allocation20_spill]] %s1464_s23  ;;  %p1155_p4 = por %p62_p2, %p61_p1 }
  0x13   : > { %p68_p5 = scmp.eq.s32.totalorder %s1143_s21, 0  ;;  %s49_s26 = ssub.s32 %s1072_s19, %s1464_s23 }
  0x14   : > { %p179_p6 = scmp.eq.s32.totalorder %s1143_s21, 1  ;;  %p52_p7 = scmp.eq.s32.totalorder %s49_s26, 0 }
  0x15   : > { %p1163_p8 = por %p68_p5, %p67_p3  ;;  %p185_p10 = scmp.eq.s32.totalorder %s739_s22, 1 }
  0x16   : > { %p1167_p9 = por %p179_p6, %p61_p1  ;;  %p804_p13 = scmp.lt.s32.totalorder %s1076_s20, 2 }
  0x17   : > { %s1439_s27 = scalar_select %p1163_p8, 1, 0 }
  0x18   : > { %s1440_s28 = scalar_select %p1167_p9, 1, 0 }
  0x19   : > { %s1172_s29 = scalar_select %p52_p7, %s1064_s17, %s54_s24  }
  0x1a   : > { %p1174_p11 = por %p185_p10, %p67_p3  ;;  %s1181_s5 = sand.u32 1, %s1064_s17  }
  0x1b   : > { %1441 = sst [smem:[#allocation21_spill]] %s1172_s29  ;;  %s1184_s6 = sshll.u32 %s1181_s5, 3 }
  0x1c   : > { %s1442_s30 = scalar_select %p1174_p11, 1, 0 }
  0x1d   : > { %s1187_s7 = sshll.u32 %s1072_s19, 7  ;;  %p1191_p0 = pnand %p804_p13, %p1155_p4 }
  0x1e   : > { %s224_s9 = sand.u32 1, %s1076_s20   ;;  %s1444_s1 = sld [smem:[#allocation22_spill]] }
  0x1f   : > { %s1443_s8 = scalar_select %p1191_p0, 1, 0 }
  0x20   : > { %s228_s13 = scalar_lea.vmem [#allocation7], %s1184_s6  ;;  %s1207_s22 = scalar_lea.sflag [#allocation8], %s224_s9 }
  0x21   : > { %s236_s14 = sshll.u32 %s228_s13, 4  ;;  %p1213_p4 = pneg %p1191_p0  ;;  %s1204_s14 = int_to_ptr.vmem [resolvable:$true] %s236_s14 }
  0x24   : > { %s1200_s12 = scalar_lea.hbm %s1444_s1, %s1187_s7  ;;  %s871_s11 = scalar_lea.hbm %s1444_s1, 256 }
  0x25   : > { %s866_s24 = scalar_lea.hbm %s1200_s12, 128  ;;  %p872_p7 = scmp.lt.u32.totalorder %s1200_s12, %s1444_s1 }
  0x26   : > { %p867_p3 = scmp.ne.s32.totalorder %s1200_s12, %s866_s24  ;;  %p873_p10 = scmp.lt.u32.totalorder %s871_s11, %s866_s24 }
  0x27   : > { %p875_p12 = scmp.lt.u32.totalorder %s866_s24, %s1200_s12 }
  0x28   : > { %p869_p5 = pnand %p1213_p4, %p867_p3  ;;  %p874_p13 = por %p873_p10, %p872_p7 }
  0x2a   : > { %p870_p6 = pneg %p869_p5  ;;  %p876_p1 = por %p875_p12, %p874_p13 }
  0x2c   : > { %p877_p2 = pnand %p876_p1, %p870_p6 }
  0x2e   : > { %880 = shalt.err (!%p877_p2)
}
  0x2f   : > { %s881_s9 = scalar_lea.vmem %s1204_s14, 128  ;;  %s1078_s26 = smov [#allocation7]  }
  0x30   : > { %p882_p3 = scmp.ne.s32.totalorder %s1204_s14, %s881_s9  ;;  %s886_s10 = sshll.u32 %s1078_s26, 4  ;;  %s887_s10 = int_to_ptr.vmem [resolvable:$false] %s886_s10 }
  0x31   : > { %s888_s23 = scalar_lea.vmem %s887_s10, 256  ;;  %p889_p9 = scmp.lt.s32.totalorder %s1204_s14, %s887_s10 }
  0x32   : > { %p884_p5 = pnand %p882_p3, %p1213_p4  ;;  %p890_p8 = scmp.lt.s32.totalorder %s888_s23, %s881_s9 }
  0x34   : > { %p885_p11 = pneg %p884_p5  ;;  %p891_p7 = por %p890_p8, %p889_p9 }
  0x36   : > { %p892_p10 = pnand %p891_p7, %p885_p11 }
  0x38   : > { %895 = shalt.err (!%p892_p10)
}
  0x39   : > { %793 = dma.hbm_to_vmem [thread:$0]  (!%p1191_p0), %s1200_s12, 128, %s1204_s14, %s1207_s22  }
  0x3a   : > { %p1446_p12 = scmp.lt.s32.totalorder %s1076_s20, 3  ;;  %p1447_p1 = scmp.ge.s32.totalorder %s1076_s20, 1 }
  0x3b   : > { %s1249_s9 = scalar_lea.hbm %s1419_s0, %s1187_s7  ;;  %s209_s26 = scalar_lea.vmem [#allocation4], %s1184_s6 }
  0x3c   : > { %p1241_p2 = pnand %p1447_p1, %p1446_p12  ;;  %s217_s10 = sshll.u32 %s209_s26, 4  ;;  %s1252_s10 = int_to_ptr.vmem [resolvable:$true] %s217_s10 }
  0x3d   : > { %s1258_s23 = scalar_lea.hbm %s1421_s2, %s1187_s7  ;;  %s206_s1 = scalar_lea.sflag [#allocation5], %s1181_s5 }
  0x3e   : > { %s1448_s24 = scalar_select %p1241_p2, 1, 0 }
  0x3f   : > { %s896_s19 = scalar_lea.hbm %s1249_s9, 128  ;;  %s901_s29 = scalar_lea.hbm %s1419_s0, 256 }
  0x40   : > { %p897_p8 = scmp.ne.s32.totalorder %s1249_s9, %s896_s19  ;;  %p902_p6 = scmp.lt.u32.totalorder %s1249_s9, %s1419_s0 }
  0x41   : > { %p903_p13 = scmp.lt.u32.totalorder %s901_s29, %s896_s19  ;;  %p905_p5 = scmp.lt.u32.totalorder %s896_s19, %s1249_s9 }
  0x42   : > { %p899_p9 = pnand %p897_p8, %p1213_p4 }
  0x43   : > { %p904_p3 = por %p903_p13, %p902_p6 }
  0x44   : > { %p900_p11 = pneg %p899_p9 }
  0x45   : > { %p906_p7 = por %p905_p5, %p904_p3 }
  0x47   : > { %p907_p10 = pnand %p906_p7, %p900_p11 }
  0x49   : > { %910 = shalt.err (!%p907_p10)
}
  0x4a   : > { %s911_s26 = scalar_lea.vmem %s1252_s10, 128  ;;  %s1079_s12 = smov [#allocation4]  }
  0x4b   : > { %p912_p12 = scmp.ne.s32.totalorder %s1252_s10, %s911_s26  ;;  %s916_s14 = sshll.u32 %s1079_s12, 4  ;;  %s917_s14 = int_to_ptr.vmem [resolvable:$false] %s916_s14 }
  0x4c   : > { %s918_s17 = scalar_lea.vmem %s917_s14, 256  ;;  %p919_p9 = scmp.lt.s32.totalorder %s1252_s10, %s917_s14 }
  0x4d   : > { %p914_p1 = pnand %p912_p12, %p1213_p4  ;;  %p920_p2 = scmp.lt.s32.totalorder %s918_s17, %s911_s26 }
  0x4f   : > { %p915_p8 = pneg %p914_p1  ;;  %p921_p6 = por %p920_p2, %p919_p9 }
  0x51   : > { %p922_p13 = pnand %p921_p6, %p915_p8 }
  0x53   : > { %925 = shalt.err (!%p922_p13)
}
  0x54   : > { %790 = dma.hbm_to_vmem [thread:$0]  (!%p1191_p0), %s1249_s9, 128, %s1252_s10, %s206_s1  }
  0x55   : > { %s247_s19 = scalar_lea.vmem [#allocation9], %s1184_s6  ;;  %s926_s29 = scalar_lea.hbm %s1258_s23, 128 }
  0x56   : > { %s256_s20 = sshll.u32 %s247_s19, 4  ;;  %p927_p11 = scmp.ne.s32.totalorder %s1258_s23, %s926_s29  ;;  %s257_s20 = int_to_ptr.vmem [resolvable:$true] %s256_s20 }
  0x57   : > { %s931_s26 = scalar_lea.hbm %s1421_s2, 256  ;;  %p932_p5 = scmp.lt.u32.totalorder %s1258_s23, %s1421_s2 }
  0x58   : > { %p929_p2 = pnand %p927_p11, %p1213_p4  ;;  %p933_p7 = scmp.lt.u32.totalorder %s931_s26, %s926_s29 }
  0x59   : > { %p935_p12 = scmp.lt.u32.totalorder %s926_s29, %s1258_s23 }
  0x5a   : > { %p930_p3 = pneg %p929_p2  ;;  %p934_p10 = por %p933_p7, %p932_p5 }
  0x5c   : > { %p936_p1 = por %p935_p12, %p934_p10 }
  0x5e   : > { %p937_p8 = pnand %p936_p1, %p930_p3 }
  0x60   : > { %940 = shalt.err (!%p937_p8)
}
  0x61   : > { %s941_s1 = scalar_lea.vmem %s257_s20, 128  ;;  %s1080_s9 = smov [#allocation9]  }
  0x62   : > { %p942_p9 = scmp.ne.s32.totalorder %s257_s20, %s941_s1  ;;  %s946_s10 = sshll.u32 %s1080_s9, 4  ;;  %s947_s10 = int_to_ptr.vmem [resolvable:$false] %s946_s10 }
  0x63   : > { %s948_s17 = scalar_lea.vmem %s947_s10, 256  ;;  %p949_p11 = scmp.lt.s32.totalorder %s257_s20, %s947_s10 }
  0x64   : > { %p944_p6 = pnand %p942_p9, %p1213_p4  ;;  %p950_p2 = scmp.lt.s32.totalorder %s948_s17, %s941_s1 }
  0x66   : > { %p945_p13 = pneg %p944_p6  ;;  %p951_p0 = por %p950_p2, %p949_p11 }
  0x68   : > { %p952_p5 = pnand %p951_p0, %p945_p13 }
  0x6a   : > { %955 = shalt.err (!%p952_p5)
}
  0x6b   : > { %p1449_p7 = scmp.ne.s32.totalorder %s1443_s8, 0  ;;  %s1305_s11 = scalar_lea.hbm %s1422_s3, %s1187_s7 }
  0x6c   : > { %s267_s13 = scalar_lea.vmem [#allocation10], %s1184_s6  ;;  %s264_s12 = scalar_lea.sflag [#allocation11], %s1181_s5 }
  0x6d   : > { %796 = dma.hbm_to_vmem [thread:$0]  (!%p1449_p7), %s1258_s23, 128, %s257_s20, %s1207_s22  }
  0x6e   : > { %s275_s26 = sshll.u32 %s267_s13, 4  ;;  %s956_s14 = scalar_lea.hbm %s1305_s11, 128  ;;  %s276_s26 = int_to_ptr.vmem [resolvable:$true] %s275_s26 }
  0x6f   : > { %p957_p0 = scmp.ne.s32.totalorder %s1305_s11, %s956_s14  ;;  %s961_s23 = scalar_lea.hbm %s1422_s3, 256 }
  0x70   : > { %p962_p12 = scmp.lt.u32.totalorder %s1305_s11, %s1422_s3  ;;  %p963_p1 = scmp.lt.u32.totalorder %s961_s23, %s956_s14 }
  0x71   : > { %p959_p3 = pnand %p957_p0, %p1213_p4  ;;  %p965_p9 = scmp.lt.u32.totalorder %s956_s14, %s1305_s11 }
  0x72   : > { %p964_p8 = por %p963_p1, %p962_p12 }
  0x73   : > { %p960_p10 = pneg %p959_p3 }
  0x74   : > { %p966_p6 = por %p965_p9, %p964_p8 }
  0x76   : > { %p967_p13 = pnand %p966_p6, %p960_p10 }
  0x78   : > { %970 = shalt.err (!%p967_p13)
}
  0x79   : > { %s971_s5 = scalar_lea.vmem %s276_s26, 128  ;;  %s1081_s6 = smov [#allocation10]  }
  0x7a   : > { %p972_p11 = scmp.ne.s32.totalorder %s276_s26, %s971_s5  ;;  %s976_s9 = sshll.u32 %s1081_s6, 4  ;;  %s977_s9 = int_to_ptr.vmem [resolvable:$false] %s976_s9 }
  0x7b   : > { %s978_s10 = scalar_lea.vmem %s977_s9, 256  ;;  %p979_p0 = scmp.lt.s32.totalorder %s276_s26, %s977_s9 }
  0x7c   : > { %p974_p2 = pnand %p972_p11, %p1213_p4  ;;  %p980_p3 = scmp.lt.s32.totalorder %s978_s10, %s971_s5 }
  0x7e   : > { %p975_p5 = pneg %p974_p2  ;;  %p981_p7 = por %p980_p3, %p979_p0 }
  0x80   : > { %p982_p1 = pnand %p981_p7, %p975_p5 }
  0x82   : > { %985 = shalt.err (!%p982_p1)
}
  0x83   : > { %p1450_p12 = scmp.ne.s32.totalorder %s1443_s8, 0  ;;  %p1451_p10 = scmp.ne.s32.totalorder %s1448_s24, 0 }
  0x84   : > { %s1329_s25 = sand.u32 (!%p1451_p10), 1, %s1060_s16   ;;  %p1452_p4 = scmp.ne.s32.totalorder (!%p1451_p10), %s1439_s27, 0 }
  0x85   : > { %799 = dma.hbm_to_vmem [thread:$0]  (!%p1450_p12), %s1305_s11, 128, %s276_s26, %s264_s12  }
  0x86   : > { %284 = sbr.rel (%p1451_p10) target bundleno = 966 (0x3c6), region = 36  ;;  %s1332_s17 = sshll.u32 (!%p1451_p10), %s1329_s25, 3 }
  0x87   : > { %s287_s19 = scalar_lea.sflag (!%p1451_p10), [#allocation5], %s1329_s25  ;;  %s290_s29 = scalar_lea.vmem (!%p1451_p10), [#allocation4], %s1332_s17 }
  0x8d   : > { %1039 = dma.done.wait (%p1452_p4), %s287_s19, 128  }
  0x8e   : > { %1041 = vsyncadd (%p1452_p4), %s287_s19, 4294967168  ;;  %s295_s8 = sand.u32 1, %s1143_s21   ;;  %s299_s11 = scalar_lea.vmem [#allocation7], %s1332_s17 }
  0x8f   : > { %s296_s24 = scalar_lea.sflag [#allocation8], %s295_s8 }
  0x90   : > { %1043 = dma.done.wait (%p1452_p4), %s296_s24, 256  }
  0x91   : > { %1045 = vsyncadd (%p1452_p4), %s296_s24, 4294967040  ;;  %s308_s13 = scalar_lea.vmem [#allocation9], %s1332_s17  ;;  %s314_s26 = scalar_lea.sflag [#allocation11], %s1329_s25 }
  0x92   : > { %s317_s12 = scalar_lea.vmem [#allocation10], %s1332_s17 }
  0x93   : > { %1047 = dma.done.wait (%p1452_p4), %s314_s26, 128  }
  0x94   : > { %1049 = vsyncadd (%p1452_p4), %s314_s26, 4294967168  ;;  %v1082_v0 = vmov 0.0   ;;  %vm1083_vm0 = vmmov 0   ;;  %vm368_vm1 = vcmask 261120   ;;  %v367_v1 = vld [vmem:[%s299_s11] sm:$0xff]  ;;  %v366_v2 = vld [vmem:[%s290_s29] sm:$0xff] }
  0x95   : > { %767 = vmatprep.subr.mxu0 %v1082_v0  ;;  %769 = vmatprep.mubr.msk.f32.mxu0 %vm1083_vm0, %v1082_v0  ;;  %vm361_vm2 = vcmask 7168   ;;  %v1084_v3 = vmov -inf   ;;  %v446_v5 = vld [vmem:[%s308_s13] sm:$0xff]  ;;  %vm364_vm3 = vcmask 64512   ;;  %v1085_v10 = vmov 0   ;;  %v473_v15 = vld [vmem:[%s317_s12] sm:$0xff] }
  0x96   : > { %772 = vmatprep.subr.mxu1 %v1082_v0  ;;  %774 = vmatprep.mubr.msk.f32.mxu1 %vm1083_vm0, %v1082_v0  ;;  %362 = vst.msk [vmem:[#allocation2] sm:$0xff] %vm361_vm2, %v1084_v3  ;;  %363 = vst.msk [vmem:[#allocation3] sm:$0xff] %vm361_vm2, %v1082_v0  ;;  %s356_s21 = scalar_lea.vmem [#allocation12], %s1332_s17  ;;  %s760_s27 = sshll.u32 %s1068_s18, 7 }
  0x97   : > { %768 = vmatpush3.xpose.msk.msra.mxu0 %vm368_vm1, %v367_v1  ;;  %858 = vset.pattern.permute.xlu0 %v1085_v10  ;;  %365 = vst.msk [vmem:[%s356_s21] sm:$0xff] %vm364_vm3, %v1082_v0  ;;  %s585_s14 = sshll.u32 %s356_s21, 4  ;;  %s1369_s23 = scalar_lea.hbm %s1423_s4, %s760_s27  ;;  %s1371_s14 = int_to_ptr.vmem [resolvable:$true] %s585_s14 }
  0x98   : > { %859 = vset.pattern.permute.xlu1 %v1085_v10  ;;  %773 = vmatpush3.msra.mxu1 %v473_v15  ;;  %s571_s20 = scalar_lea.sflag [#allocation6], %s1329_s25  ;;  %s986_s7 = scalar_lea.vmem %s1371_s14, 128 }
  0x99   : > { %p987_p7 = scmp.ne.s32.totalorder %s1371_s14, %s986_s7  ;;  %p1453_p8 = scmp.ne.s32.totalorder %s1440_s28, 0 }
  0x9a   : > { %770 = vmatmul.mubr.msk.f32.vlgmr.msra.gmra.mrb[0].mxu0 %vm368_vm1, %v366_v2  ;;  %s1086_s18 = smov [#allocation12]  }
  0x9b   : > { %p988_p9 = pnand %p987_p7, %p1453_p8  ;;  %s990_s5 = sshll.u32 %s1086_s18, 4  ;;  %s991_s5 = int_to_ptr.vmem [resolvable:$false] %s990_s5 }
  0x9c   : > { %s992_s6 = scalar_lea.vmem %s991_s5, 256  ;;  %p993_p13 = scmp.lt.s32.totalorder %s1371_s14, %s991_s5 }
  0x9d   : > { %v448_v11 = vld [vmem:[#allocation2] sm:$0xff]  ;;  %v465_v23 = vld [vmem:[#allocation3] sm:$0xff]  ;;  %p989_p6 = pneg %p988_p9  ;;  %p994_p11 = scmp.lt.s32.totalorder %s992_s6, %s986_s7 }
  0x9e   : > { %v474_v29 = vld [vmem:[%s356_s21] sm:$0xff] }
  0x9f   : > { %p995_p2 = por %p994_p11, %p993_p13 }
  0xa1   : > { %p996_p5 = pnand %p995_p2, %p989_p6 }
 0x16d   : > { %v441_v4 = vpop.f32.mrb[0].mxu0 }
 0x16e   : > { %v445_v6 = vmul.f32 0.17677669, %v441_v4  ;;  %v771_v7 = vpop.f32.mrb[1].mxu0 }
 0x170   : > { %v447_v8 = vadd.f32 %v446_v5, %v445_v6 }
 0x172   : > { %v450_v9 = vsel %vm364_vm3, %v447_v8, -inf }
 0x173   : > { %451 = vmax.xlane.f32.xlu0 %v450_v9 }
 0x200   : > { %v452_v12 = vpop.xlane.xlu0 %451 }
 0x201   : > { %v453_v13 = vmax.f32 %v448_v11, %v452_v12 }
 0x203   : > { %v454_v14 = vsub.f32 %v448_v11, %v453_v13  ;;  %556 = vst.msk [vmem:[#allocation2] sm:$0xff] %vm361_vm2, %v453_v13  ;;  %459 = vperm.xlu0 %858, %v453_v13  }
 0x205   : > { %v455_v21 = vmul.f32 1.442695, %v454_v14 }
 0x282   : > { %v460_v16 = vpop.permute.xlu0 %459 }
 0x283   : > { %v462_v17 = vsub.f32 %v447_v8, %v460_v16 }
 0x285   : > { %v463_v18 = vmul.f32 1.442695, %v462_v17 }
 0x287   : > { %860 = vpow2.f32 %v463_v18 }
 0x288   : > { %862 = vpow2.f32 %v455_v21 }
 0x291   : > { %v861_v19 = vpop.eup %860 }
 0x292   : > { %775 = vmatmul.mubr.msk.f32.vlgmr.msra.gmra.mrb[0].mxu1 %vm364_vm3, %v861_v19  ;;  %v467_v20 = vsel %vm364_vm3, %v861_v19, 0.0  ;;  %v863_v22 = vpop.eup %862 }
 0x293   : > { %468 = vadd.xlane.f32.xlu1 %v467_v20  ;;  %v466_v24 = vmul.f32 %v863_v22, %v465_v23 }
 0x2a4   : > { %477 = vperm.xlu1 %859, %v863_v22  }
 0x320   : > { %v469_v25 = vpop.xlane.xlu1 %468 }
 0x321   : > { %v470_v26 = vadd.f32 %v469_v25, %v466_v24 }
 0x323   : > { %472 = vst.msk [vmem:[#allocation3] sm:$0xff] %vm361_vm2, %v470_v26 }
 0x324   : > { %v478_v30 = vpop.permute.xlu1 %477 }
 0x325   : > { %v480_v31 = vmul.f32 %v478_v30, %v474_v29 }
 0x32a   : > { %v560_v27 = vld [vmem:[#allocation3] sm:$0xff] }
 0x32b   : > { %864 = vrcp.f32 %v560_v27 }
 0x335   : > { %v865_v28 = vpop.eup %864 }
 0x336   : > { %565 = vperm.xlu1 %859, %v865_v28  }
 0x365   : > { %v550_v32 = vpop.f32.mrb[0].mxu1 }
 0x366   : > { %v554_v33 = vadd.f32 %v550_v32, %v480_v31  ;;  %v776_v34 = vpop.f32.mrb[1].mxu1 }
 0x368   : > { %555 = vst.msk [vmem:[%s356_s21] sm:$0xff] %vm364_vm3, %v554_v33 }
 0x36f   : > { %v562_v35 = vld [vmem:[%s356_s21] sm:$0xff] }
 0x3b5   : > { %v566_v36 = vpop.permute.xlu1 %565 }
 0x3b6   : > { %v568_v37 = vmul.f32 %v566_v36, %v562_v35 }
 0x3b8   : > { %569 = vst.msk [vmem:[%s356_s21] sm:$0xff] %vm364_vm3, %v568_v37 }
 0x3b9   : > { %999 = shalt.err (!%p996_p5)
}
 0x3ba   : > { %s1000_s9 = scalar_lea.hbm %s1369_s23, 128  ;;  %s1004_s17 = scalar_lea.hbm %s1423_s4, 256 }
 0x3bb   : > { %p1001_p0 = scmp.ne.s32.totalorder %s1369_s23, %s1000_s9  ;;  %p1005_p12 = scmp.lt.u32.totalorder %s1369_s23, %s1423_s4 }
 0x3bc   : > { %p1006_p10 = scmp.lt.u32.totalorder %s1004_s17, %s1000_s9  ;;  %p1008_p7 = scmp.lt.u32.totalorder %s1000_s9, %s1369_s23 }
 0x3bd   : > { %p1002_p3 = pnand %p1001_p0, %p1453_p8 }
 0x3be   : > { %p1007_p4 = por %p1006_p10, %p1005_p12 }
 0x3bf   : > { %p1003_p1 = pneg %p1002_p3 }
 0x3c0   : > { %p1009_p9 = por %p1008_p7, %p1007_p4 }
 0x3c2   : > { %p1010_p6 = pnand %p1009_p9, %p1003_p1 }
 0x3c4   : > { %1013 = shalt.err (!%p1010_p6)
}
 0x3c5   : > { %785 = dma.vmem_to_hbm [thread:$0]  (%p1453_p8), %s1371_s14, 128, %s1369_s23, %s571_s20  }
 0x3c6 PF: > { %s1454_s8 = sld [smem:[#allocation19_spill]]  ;;  %s597_s24 = sand.u32 1, %s1056_s15  }
 0x3c7   : > { %p1455_p13 = scmp.ne.s32.totalorder %s1442_s30, 0  ;;  %s598_s11 = scalar_lea.sflag [#allocation6], %s597_s24 }
 0x3cc   : > { %p1456_p11 = scmp.ge.s32.totalorder %s1454_s8, 2 }
 0x3ce   : > { %p801_p2 = pnand %p1456_p11, %p1455_p13 }
 0x3d0   : > { %1051 = dma.done.wait (!%p801_p2), %s598_s11, 128  }
 0x3d1   : > { %1053 = vsyncadd (!%p801_p2), %s598_s11, 4294967168  ;;  %s26_s20 = sadd.s32 1, %s1454_s8   ;;  %s1457_s13 = sld [smem:[#allocation17_spill]] }
 0x3d2   : > { %p23_p5 = scmp.ge.s32.totalorder %s26_s20, 4   ;;  %s1458_s17 = sld [smem:[#allocation21_spill]] }
 0x3d3   : > { %s1459_s18 = sld [smem:[#allocation18_spill]]  ;;  %s1460_s19 = sld [smem:[#allocation20_spill]] }
 0x3d4   : > { %s1461_s15 = smov %s1060_s16  ;;  %25 = sbr.rel (!%p23_p5) target bundleno = 12 (0xc), region = 126 }
 0x3d7   : > { %s1462_s16 = smov %s1457_s13 }
 0x3db   :  { %603 = vsyncpa [#allocation5], 1 }
 0x3dc   :  { %605 = vsyncpa [#allocation5 + $0x1], 1 }
 0x3dd   :  { %606 = vsyncpa [#allocation8], 1 }
 0x3de   :  { %608 = vsyncpa [#allocation8 + $0x1], 1 }
 0x3df   :  { %609 = vsyncpa [#allocation11], 1 }
 0x3e0   :  { %611 = vsyncpa [#allocation11 + $0x1], 1 }
 0x3e1   :  { %612 = vsyncpa [#allocation6], 1 }
 0x3e2   :  { %614 = vsyncpa [#allocation6 + $0x1], 1 }

</bundles_post_ra>
